<compile_context>
chip_gen: v5e
topology: v5e:2x2
jax: 0.10.0
libtpu: 0.0.40
codegen_flags: <defaults>
</compile_context>

<pallas_src>
import jax
import jax.numpy as jnp
from jax.experimental import pallas as pl
from jax.experimental.pallas import tpu as pltpu

K = 5          # conv kernel size
PAD = 2        # padding on each side
EPS = 1e-5     # BatchNorm eps
LANES = 128    # TPU lane width


def _round_up(x, m):
    return ((x + m - 1) // m) * m


def _pick_batch_block(n, l):
    """Batch elements per grid step: grow per-step MXU M (~B_blk*L) toward ~256 rows,
    but keep >= 2 grid iterations when the batch allows so both TensorCores get work."""
    b = max(1, min(n, 256 // max(l, 1)))
    while b > 1 and -(-n // b) < 2:
        b = max(1, b // 2)
    return b


def conv_block_kernel(x_ref, w1_ref, c1_ref, w2_ref, c2_ref, o_ref, hpad_ref):
    # x_ref   : (B, Lp, Cin_p)    bf16  zero-padded input slab (NLC: spatial halo + lane pad)
    # w1_ref  : (K, Cin_p, Cout_p) bf16 conv1 weights with BN1 scale folded in (resident)
    # c1_ref  : (1, Cout_p)       f32   folded conv1-bias + BN1 shift
    # w2_ref  : (K, Cout_p, Cout_p) bf16 conv2 weights with BN2 scale folded in (resident)
    # c2_ref  : (1, Cout_p)       f32
    # o_ref   : (B, L, Cout_p)    f32   lane-dense output slab
    # hpad_ref: (B, Lp, Cout_p)   bf16  scratch for the spatially padded intermediate
    bblk, lp, _ = x_ref.shape
    l_out = o_ref.shape[1]
    c_p = o_ref.shape[2]

    # Hoist weight loads / broadcasts out of the per-sample loop.
    w1 = [w1_ref[k] for k in range(K)]
    w2 = [w2_ref[k] for k in range(K)]
    c1 = jnp.broadcast_to(c1_ref[0], (l_out, c_p))
    c2 = jnp.broadcast_to(c2_ref[0], (l_out, c_p))
    halo = jnp.zeros((PAD, c_p), hpad_ref.dtype)

    for b in range(bblk):                       # static unroll; B_blk is small
        xb = x_ref[b]                           # (Lp, Cin_p) bf16, read once

        # ---- Conv1: K full-slab MXU matmuls, shift-accumulated in f32 ----
        acc = jnp.zeros((l_out, c_p), jnp.float32)
        for k in range(K):
            yk = jnp.dot(xb, w1[k], preferred_element_type=jnp.float32)   # (Lp, Cout_p)
            acc += yk[k:k + l_out, :]
        h = jnp.maximum(acc + c1, 0.0)          # folded bias/BN shift + ReLU

        # ---- stage padded intermediate (bf16); zero only the 2*PAD halo rows ----
        hpad_ref[b, :PAD, :] = halo
        hpad_ref[b, PAD + l_out:, :] = halo
        hpad_ref[b, PAD:PAD + l_out, :] = h.astype(hpad_ref.dtype)
        hb = hpad_ref[b]                        # (Lp, Cout_p) bf16, read once

        # ---- Conv2 ----
        acc2 = jnp.zeros((l_out, c_p), jnp.float32)
        for k in range(K):
            yk = jnp.dot(hb, w2[k], preferred_element_type=jnp.float32)   # (Lp, Cout_p)
            acc2 += yk[k:k + l_out, :]
        o_ref[b] = jnp.maximum(acc2 + c2, 0.0).astype(o_ref.dtype)


def conv_block_forward(x_ncl, w1, b1, g1, be1, rm1, rv1,
                       w2, b2, g2, be2, rm2, rv2,
                       compute_dtype=jnp.bfloat16):
    """x_ncl: (N, Cin, L) float32, PyTorch NCL layout. Returns (N, Cout, L) float32."""
    n, cin, l = x_ncl.shape
    cout = w1.shape[0]

    cin_p = _round_up(cin, LANES)
    cout_p = _round_up(cout, LANES)
    lp = l + 2 * PAD
    bblk = _pick_batch_block(n, l)
    n_steps = pl.cdiv(n, bblk)
    n_p = n_steps * bblk

    # Fold eval-mode BN: scale goes into the conv weights, shift stays as a per-channel add.
    s1 = g1 / jnp.sqrt(rv1 + EPS)
    s2 = g2 / jnp.sqrt(rv2 + EPS)
    c1 = ((b1 - rm1) * s1 + be1).reshape(1, cout)
    c2 = ((b2 - rm2) * s2 + be2).reshape(1, cout)

    # PyTorch Conv1d weight (Cout, Cin, K) -> (K, Cin, Cout), BN scale folded, lane-padded, bf16.
    w1_k = jnp.transpose(w1, (2, 1, 0)) * s1[None, None, :]
    w2_k = jnp.transpose(w2, (2, 1, 0)) * s2[None, None, :]
    w1_k = jnp.pad(w1_k, ((0, 0), (0, cin_p - cin), (0, cout_p - cout))).astype(compute_dtype)
    w2_k = jnp.pad(w2_k, ((0, 0), (0, cout_p - cout), (0, cout_p - cout))).astype(compute_dtype)
    c1_p = jnp.pad(c1, ((0, 0), (0, cout_p - cout))).astype(jnp.float32)
    c2_p = jnp.pad(c2, ((0, 0), (0, cout_p - cout))).astype(jnp.float32)

    # NCL -> NLC; one pad op covers batch round-up, spatial halo and channel lane padding.
    x_nlc = jnp.transpose(x_ncl, (0, 2, 1))
    x_pad = jnp.pad(x_nlc, ((0, n_p - n), (PAD, PAD), (0, cin_p - cin))).astype(compute_dtype)

    out_nlc = pl.pallas_call(
        conv_block_kernel,
        out_shape=jax.ShapeDtypeStruct((n_p, l, cout_p), jnp.float32),
        grid_spec=pltpu.PrefetchScalarGridSpec(
            num_scalar_prefetch=0,
            grid=(n_steps,),
            in_specs=[
                pl.BlockSpec((bblk, lp, cin_p), lambda g: (g, 0, 0)),     # x (bf16)
                pl.BlockSpec((K, cin_p, cout_p), lambda g: (0, 0, 0)),    # w1 (resident)
                pl.BlockSpec((1, cout_p), lambda g: (0, 0)),              # c1
                pl.BlockSpec((K, cout_p, cout_p), lambda g: (0, 0, 0)),   # w2 (resident)
                pl.BlockSpec((1, cout_p), lambda g: (0, 0)),              # c2
            ],
            out_specs=pl.BlockSpec((bblk, l, cout_p), lambda g: (g, 0, 0)),
            scratch_shapes=[pltpu.VMEM((bblk, lp, cout_p), compute_dtype)],
        ),
        compiler_params=pltpu.CompilerParams(
            dimension_semantics=("parallel",)),
        # TODO(synk): for very long L / wide channels on v7x (64 MiB VMEM) add an L-tile grid
        #             axis with a PAD-row halo and set vmem_limit_bytes explicitly.
    )(x_pad, w1_k, c1_p, w2_k, c2_p)

    # Strip batch/channel padding, NLC -> NCL to match the PyTorch output layout.
    return jnp.transpose(out_nlc[:n, :, :cout], (0, 2, 1))


def _reference_forward(x_ncl, w1, b1, g1, be1, rm1, rv1, w2, b2, g2, be2, rm2, rv2):
    """Plain-JAX f32 reference of the PyTorch forward (eval-mode BN)."""
    dn = ("NCH", "OIH", "NCH")

    def bn(y, g, be, rm, rv):
        return (y - rm[None, :, None]) / jnp.sqrt(rv + EPS)[None, :, None] \
            * g[None, :, None] + be[None, :, None]

    y = jax.lax.conv_general_dilated(x_ncl, w1, (1,), [(PAD, PAD)],
                                     dimension_numbers=dn)
    y = jnp.maximum(bn(y + b1[None, :, None], g1, be1, rm1, rv1), 0.0)
    y = jax.lax.conv_general_dilated(y, w2, (1,), [(PAD, PAD)],
                                     dimension_numbers=dn)
    y = jnp.maximum(bn(y + b2[None, :, None], g2, be2, rm2, rv2), 0.0)
    return y


if __name__ == "__main__":
    # Small shapes: batch=2, in_ch=4, out_ch=8, length=16
    N, CIN, COUT, L = 2, 4, 8, 16

    key = jax.random.PRNGKey(0)
    kx, kw1, kb1, kw2, kb2 = jax.random.split(key, 5)

    x = jax.random.normal(kx, (N, CIN, L), dtype=jnp.float32)

    # Conv parameters (PyTorch weight layout: (out_ch, in_ch, K))
    w1 = jax.random.normal(kw1, (COUT, CIN, K), dtype=jnp.float32) * 0.2
    b1 = jax.random.normal(kb1, (COUT,), dtype=jnp.float32) * 0.1
    w2 = jax.random.normal(kw2, (COUT, COUT, K), dtype=jnp.float32) * 0.2
    b2 = jax.random.normal(kb2, (COUT,), dtype=jnp.float32) * 0.1

    # BatchNorm parameters at PyTorch defaults (eval mode)
    g1 = jnp.ones((COUT,), jnp.float32)
    be1 = jnp.zeros((COUT,), jnp.float32)
    rm1 = jnp.zeros((COUT,), jnp.float32)
    rv1 = jnp.ones((COUT,), jnp.float32)
    g2 = jnp.ones((COUT,), jnp.float32)
    be2 = jnp.zeros((COUT,), jnp.float32)
    rm2 = jnp.zeros((COUT,), jnp.float32)
    rv2 = jnp.ones((COUT,), jnp.float32)

    fwd = jax.jit(conv_block_forward)
    out = jax.block_until_ready(fwd(x, w1, b1, g1, be1, rm1, rv1,
                                    w2, b2, g2, be2, rm2, rv2))
    ref = jax.block_until_ready(_reference_forward(x, w1, b1, g1, be1, rm1, rv1,
                                                   w2, b2, g2, be2, rm2, rv2))

    assert out.shape == (N, COUT, L), out.shape
    # bf16 MXU operands (f32 accumulation) vs f32 reference -> loosened tolerance.
    max_err = float(jnp.max(jnp.abs(out - ref)))
    assert jnp.allclose(out, ref, atol=5e-2, rtol=5e-2), max_err

    print("KERNEL_OK")
</pallas_src>

<mosaic_0001>
module attributes {stable_mosaic.version = 11 : i64} {
  func.func @conv_block_kernel(%arg0: i32, %arg1: memref<1x20x128xbf16, #tpu.memory_space<vmem>>, %arg2: memref<5x128x128xbf16, #tpu.memory_space<vmem>>, %arg3: memref<1x128xf32, #tpu.memory_space<vmem>>, %arg4: memref<5x128x128xbf16, #tpu.memory_space<vmem>>, %arg5: memref<1x128xf32, #tpu.memory_space<vmem>>, %arg6: memref<1x16x128xf32, #tpu.memory_space<vmem>>, %arg7: memref<1x20x128xbf16, #tpu.memory_space<vmem>>) attributes {dimension_semantics = [#tpu.dimension_semantics<parallel>], iteration_bounds = array<i64: 2>, scalar_prefetch = 0 : i64, scratch_operands = 1 : i64, tpu.core_type = #tpu.core_type<tc>, window_params = [{transform_indices = @transform_0, window_bounds = array<i64: 1, 20, 128>}, {pipeline_mode = #tpu.pipeline_mode<synchronous>, transform_indices = @transform_1, window_bounds = array<i64: 5, 128, 128>}, {pipeline_mode = #tpu.pipeline_mode<synchronous>, transform_indices = @transform_2, window_bounds = array<i64: 1, 128>}, {pipeline_mode = #tpu.pipeline_mode<synchronous>, transform_indices = @transform_3, window_bounds = array<i64: 5, 128, 128>}, {pipeline_mode = #tpu.pipeline_mode<synchronous>, transform_indices = @transform_4, window_bounds = array<i64: 1, 128>}, {transform_indices = @transform_5, window_bounds = array<i64: 1, 16, 128>}]} {
    %c0 = arith.constant 0 : index
    %c0_0 = arith.constant 0 : index
    %c0_1 = arith.constant 0 : index
    %0 = vector.load %arg2[%c0, %c0_0, %c0_1] : memref<5x128x128xbf16, #tpu.memory_space<vmem>>, vector<1x128x128xbf16>
    %1 = vector.shape_cast %0 : vector<1x128x128xbf16> to vector<128x128xbf16>
    %c1 = arith.constant 1 : index
    %c0_2 = arith.constant 0 : index
    %c0_3 = arith.constant 0 : index
    %2 = vector.load %arg2[%c1, %c0_2, %c0_3] : memref<5x128x128xbf16, #tpu.memory_space<vmem>>, vector<1x128x128xbf16>
    %3 = vector.shape_cast %2 : vector<1x128x128xbf16> to vector<128x128xbf16>
    %c2 = arith.constant 2 : index
    %c0_4 = arith.constant 0 : index
    %c0_5 = arith.constant 0 : index
    %4 = vector.load %arg2[%c2, %c0_4, %c0_5] : memref<5x128x128xbf16, #tpu.memory_space<vmem>>, vector<1x128x128xbf16>
    %5 = vector.shape_cast %4 : vector<1x128x128xbf16> to vector<128x128xbf16>
    %c3 = arith.constant 3 : index
    %c0_6 = arith.constant 0 : index
    %c0_7 = arith.constant 0 : index
    %6 = vector.load %arg2[%c3, %c0_6, %c0_7] : memref<5x128x128xbf16, #tpu.memory_space<vmem>>, vector<1x128x128xbf16>
    %7 = vector.shape_cast %6 : vector<1x128x128xbf16> to vector<128x128xbf16>
    %c4 = arith.constant 4 : index
    %c0_8 = arith.constant 0 : index
    %c0_9 = arith.constant 0 : index
    %8 = vector.load %arg2[%c4, %c0_8, %c0_9] : memref<5x128x128xbf16, #tpu.memory_space<vmem>>, vector<1x128x128xbf16>
    %9 = vector.shape_cast %8 : vector<1x128x128xbf16> to vector<128x128xbf16>
    %c0_10 = arith.constant 0 : index
    %c0_11 = arith.constant 0 : index
    %c0_12 = arith.constant 0 : index
    %10 = vector.load %arg4[%c0_10, %c0_11, %c0_12] : memref<5x128x128xbf16, #tpu.memory_space<vmem>>, vector<1x128x128xbf16>
    %11 = vector.shape_cast %10 : vector<1x128x128xbf16> to vector<128x128xbf16>
    %c1_13 = arith.constant 1 : index
    %c0_14 = arith.constant 0 : index
    %c0_15 = arith.constant 0 : index
    %12 = vector.load %arg4[%c1_13, %c0_14, %c0_15] : memref<5x128x128xbf16, #tpu.memory_space<vmem>>, vector<1x128x128xbf16>
    %13 = vector.shape_cast %12 : vector<1x128x128xbf16> to vector<128x128xbf16>
    %c2_16 = arith.constant 2 : index
    %c0_17 = arith.constant 0 : index
    %c0_18 = arith.constant 0 : index
    %14 = vector.load %arg4[%c2_16, %c0_17, %c0_18] : memref<5x128x128xbf16, #tpu.memory_space<vmem>>, vector<1x128x128xbf16>
    %15 = vector.shape_cast %14 : vector<1x128x128xbf16> to vector<128x128xbf16>
    %c3_19 = arith.constant 3 : index
    %c0_20 = arith.constant 0 : index
    %c0_21 = arith.constant 0 : index
    %16 = vector.load %arg4[%c3_19, %c0_20, %c0_21] : memref<5x128x128xbf16, #tpu.memory_space<vmem>>, vector<1x128x128xbf16>
    %17 = vector.shape_cast %16 : vector<1x128x128xbf16> to vector<128x128xbf16>
    %c4_22 = arith.constant 4 : index
    %c0_23 = arith.constant 0 : index
    %c0_24 = arith.constant 0 : index
    %18 = vector.load %arg4[%c4_22, %c0_23, %c0_24] : memref<5x128x128xbf16, #tpu.memory_space<vmem>>, vector<1x128x128xbf16>
    %19 = vector.shape_cast %18 : vector<1x128x128xbf16> to vector<128x128xbf16>
    %c0_25 = arith.constant 0 : index
    %c0_26 = arith.constant 0 : index
    %20 = vector.load %arg3[%c0_25, %c0_26] : memref<1x128xf32, #tpu.memory_space<vmem>>, vector<1x128xf32>
    %21 = vector.shape_cast %20 : vector<1x128xf32> to vector<128xf32>
    %22 = vector.shape_cast %21 : vector<128xf32> to vector<1x128xf32>
    %23 = vector.broadcast %22 : vector<1x128xf32> to vector<16x128xf32>
    %c0_27 = arith.constant 0 : index
    %c0_28 = arith.constant 0 : index
    %24 = vector.load %arg5[%c0_27, %c0_28] : memref<1x128xf32, #tpu.memory_space<vmem>>, vector<1x128xf32>
    %25 = vector.shape_cast %24 : vector<1x128xf32> to vector<128xf32>
    %26 = vector.shape_cast %25 : vector<128xf32> to vector<1x128xf32>
    %27 = vector.broadcast %26 : vector<1x128xf32> to vector<16x128xf32>
    %cst = arith.constant 0.000000e+00 : bf16
    %28 = vector.broadcast %cst : bf16 to vector<2x128xbf16>
    %c0_29 = arith.constant 0 : index
    %c0_30 = arith.constant 0 : index
    %c0_31 = arith.constant 0 : index
    %29 = vector.load %arg1[%c0_29, %c0_30, %c0_31] : memref<1x20x128xbf16, #tpu.memory_space<vmem>>, vector<1x20x128xbf16>
    %30 = vector.shape_cast %29 : vector<1x20x128xbf16> to vector<20x128xbf16>
    %cst_32 = arith.constant 0.000000e+00 : f32
    %31 = vector.broadcast %cst_32 : f32 to vector<16x128xf32>
    %cst_33 = arith.constant dense<0.000000e+00> : vector<20x128xf32>
    %32 = tpu.matmul %30, %1, %cst_33 {dimension_numbers = #tpu.dot_dimension_numbers<[1], [0], [0], [1], [0, 0, 1, 1], [], []>} : vector<20x128xbf16>, vector<128x128xbf16>, vector<20x128xf32> -> vector<20x128xf32>
    %33 = vector.extract_strided_slice %32 {offsets = [0, 0], sizes = [16, 128], strides = [1, 1]} : vector<20x128xf32> to vector<16x128xf32>
    %34 = arith.addf %31, %33 : vector<16x128xf32>
    %cst_34 = arith.constant dense<0.000000e+00> : vector<20x128xf32>
    %35 = tpu.matmul %30, %3, %cst_34 {dimension_numbers = #tpu.dot_dimension_numbers<[1], [0], [0], [1], [0, 0, 1, 1], [], []>} : vector<20x128xbf16>, vector<128x128xbf16>, vector<20x128xf32> -> vector<20x128xf32>
    %36 = vector.extract_strided_slice %35 {offsets = [1, 0], sizes = [16, 128], strides = [1, 1]} : vector<20x128xf32> to vector<16x128xf32>
    %37 = arith.addf %34, %36 : vector<16x128xf32>
    %cst_35 = arith.constant dense<0.000000e+00> : vector<20x128xf32>
    %38 = tpu.matmul %30, %5, %cst_35 {dimension_numbers = #tpu.dot_dimension_numbers<[1], [0], [0], [1], [0, 0, 1, 1], [], []>} : vector<20x128xbf16>, vector<128x128xbf16>, vector<20x128xf32> -> vector<20x128xf32>
    %39 = vector.extract_strided_slice %38 {offsets = [2, 0], sizes = [16, 128], strides = [1, 1]} : vector<20x128xf32> to vector<16x128xf32>
    %40 = arith.addf %37, %39 : vector<16x128xf32>
    %cst_36 = arith.constant dense<0.000000e+00> : vector<20x128xf32>
    %41 = tpu.matmul %30, %7, %cst_36 {dimension_numbers = #tpu.dot_dimension_numbers<[1], [0], [0], [1], [0, 0, 1, 1], [], []>} : vector<20x128xbf16>, vector<128x128xbf16>, vector<20x128xf32> -> vector<20x128xf32>
    %42 = vector.extract_strided_slice %41 {offsets = [3, 0], sizes = [16, 128], strides = [1, 1]} : vector<20x128xf32> to vector<16x128xf32>
    %43 = arith.addf %40, %42 : vector<16x128xf32>
    %cst_37 = arith.constant dense<0.000000e+00> : vector<20x128xf32>
    %44 = tpu.matmul %30, %9, %cst_37 {dimension_numbers = #tpu.dot_dimension_numbers<[1], [0], [0], [1], [0, 0, 1, 1], [], []>} : vector<20x128xbf16>, vector<128x128xbf16>, vector<20x128xf32> -> vector<20x128xf32>
    %45 = vector.extract_strided_slice %44 {offsets = [4, 0], sizes = [16, 128], strides = [1, 1]} : vector<20x128xf32> to vector<16x128xf32>
    %46 = arith.addf %43, %45 : vector<16x128xf32>
    %47 = arith.addf %46, %23 : vector<16x128xf32>
    %cst_38 = arith.constant 0.000000e+00 : f32
    %48 = vector.broadcast %cst_38 : f32 to vector<16x128xf32>
    %49 = arith.maximumf %47, %48 : vector<16x128xf32>
    %c0_39 = arith.constant 0 : index
    %c0_40 = arith.constant 0 : index
    %c0_41 = arith.constant 0 : index
    %50 = vector.load %arg7[%c0_39, %c0_40, %c0_41] : memref<1x20x128xbf16, #tpu.memory_space<vmem>>, vector<1x2x128xbf16>
    %51 = vector.shape_cast %50 : vector<1x2x128xbf16> to vector<2x128xbf16>
    %52 = vector.shape_cast %28 : vector<2x128xbf16> to vector<1x2x128xbf16>
    tpu.vector_store %arg7[%c0_39, %c0_40, %c0_41], %52 {strides = array<i32>} : memref<1x20x128xbf16, #tpu.memory_space<vmem>>, vector<1x2x128xbf16>,
    %c0_42 = arith.constant 0 : index
    %c18 = arith.constant 18 : index
    %c0_43 = arith.constant 0 : index
    %53 = vector.load %arg7[%c0_42, %c18, %c0_43] : memref<1x20x128xbf16, #tpu.memory_space<vmem>>, vector<1x2x128xbf16>
    %54 = vector.shape_cast %53 : vector<1x2x128xbf16> to vector<2x128xbf16>
    %55 = vector.shape_cast %28 : vector<2x128xbf16> to vector<1x2x128xbf16>
    tpu.vector_store %arg7[%c0_42, %c18, %c0_43], %55 {strides = array<i32>} : memref<1x20x128xbf16, #tpu.memory_space<vmem>>, vector<1x2x128xbf16>,
    %56 = arith.truncf %49 : vector<16x128xf32> to vector<16x128xbf16>
    %c0_44 = arith.constant 0 : index
    %c2_45 = arith.constant 2 : index
    %c0_46 = arith.constant 0 : index
    %57 = vector.load %arg7[%c0_44, %c2_45, %c0_46] : memref<1x20x128xbf16, #tpu.memory_space<vmem>>, vector<1x16x128xbf16>
    %58 = vector.shape_cast %57 : vector<1x16x128xbf16> to vector<16x128xbf16>
    %59 = vector.shape_cast %56 : vector<16x128xbf16> to vector<1x16x128xbf16>
    tpu.vector_store %arg7[%c0_44, %c2_45, %c0_46], %59 {strides = array<i32>} : memref<1x20x128xbf16, #tpu.memory_space<vmem>>, vector<1x16x128xbf16>,
    %c0_47 = arith.constant 0 : index
    %c0_48 = arith.constant 0 : index
    %c0_49 = arith.constant 0 : index
    %60 = vector.load %arg7[%c0_47, %c0_48, %c0_49] : memref<1x20x128xbf16, #tpu.memory_space<vmem>>, vector<1x20x128xbf16>
    %61 = vector.shape_cast %60 : vector<1x20x128xbf16> to vector<20x128xbf16>
    %cst_50 = arith.constant 0.000000e+00 : f32
    %62 = vector.broadcast %cst_50 : f32 to vector<16x128xf32>
    %cst_51 = arith.constant dense<0.000000e+00> : vector<20x128xf32>
    %63 = tpu.matmul %61, %11, %cst_51 {dimension_numbers = #tpu.dot_dimension_numbers<[1], [0], [0], [1], [0, 0, 1, 1], [], []>} : vector<20x128xbf16>, vector<128x128xbf16>, vector<20x128xf32> -> vector<20x128xf32>
    %64 = vector.extract_strided_slice %63 {offsets = [0, 0], sizes = [16, 128], strides = [1, 1]} : vector<20x128xf32> to vector<16x128xf32>
    %65 = arith.addf %62, %64 : vector<16x128xf32>
    %cst_52 = arith.constant dense<0.000000e+00> : vector<20x128xf32>
    %66 = tpu.matmul %61, %13, %cst_52 {dimension_numbers = #tpu.dot_dimension_numbers<[1], [0], [0], [1], [0, 0, 1, 1], [], []>} : vector<20x128xbf16>, vector<128x128xbf16>, vector<20x128xf32> -> vector<20x128xf32>
    %67 = vector.extract_strided_slice %66 {offsets = [1, 0], sizes = [16, 128], strides = [1, 1]} : vector<20x128xf32> to vector<16x128xf32>
    %68 = arith.addf %65, %67 : vector<16x128xf32>
    %cst_53 = arith.constant dense<0.000000e+00> : vector<20x128xf32>
    %69 = tpu.matmul %61, %15, %cst_53 {dimension_numbers = #tpu.dot_dimension_numbers<[1], [0], [0], [1], [0, 0, 1, 1], [], []>} : vector<20x128xbf16>, vector<128x128xbf16>, vector<20x128xf32> -> vector<20x128xf32>
    %70 = vector.extract_strided_slice %69 {offsets = [2, 0], sizes = [16, 128], strides = [1, 1]} : vector<20x128xf32> to vector<16x128xf32>
    %71 = arith.addf %68, %70 : vector<16x128xf32>
    %cst_54 = arith.constant dense<0.000000e+00> : vector<20x128xf32>
    %72 = tpu.matmul %61, %17, %cst_54 {dimension_numbers = #tpu.dot_dimension_numbers<[1], [0], [0], [1], [0, 0, 1, 1], [], []>} : vector<20x128xbf16>, vector<128x128xbf16>, vector<20x128xf32> -> vector<20x128xf32>
    %73 = vector.extract_strided_slice %72 {offsets = [3, 0], sizes = [16, 128], strides = [1, 1]} : vector<20x128xf32> to vector<16x128xf32>
    %74 = arith.addf %71, %73 : vector<16x128xf32>
    %cst_55 = arith.constant dense<0.000000e+00> : vector<20x128xf32>
    %75 = tpu.matmul %61, %19, %cst_55 {dimension_numbers = #tpu.dot_dimension_numbers<[1], [0], [0], [1], [0, 0, 1, 1], [], []>} : vector<20x128xbf16>, vector<128x128xbf16>, vector<20x128xf32> -> vector<20x128xf32>
    %76 = vector.extract_strided_slice %75 {offsets = [4, 0], sizes = [16, 128], strides = [1, 1]} : vector<20x128xf32> to vector<16x128xf32>
    %77 = arith.addf %74, %76 : vector<16x128xf32>
    %78 = arith.addf %77, %27 : vector<16x128xf32>
    %cst_56 = arith.constant 0.000000e+00 : f32
    %79 = vector.broadcast %cst_56 : f32 to vector<16x128xf32>
    %80 = arith.maximumf %78, %79 : vector<16x128xf32>
    %c0_57 = arith.constant 0 : index
    %c0_58 = arith.constant 0 : index
    %c0_59 = arith.constant 0 : index
    %81 = vector.load %arg6[%c0_57, %c0_58, %c0_59] : memref<1x16x128xf32, #tpu.memory_space<vmem>>, vector<1x16x128xf32>
    %82 = vector.shape_cast %81 : vector<1x16x128xf32> to vector<16x128xf32>
    %83 = vector.shape_cast %80 : vector<16x128xf32> to vector<1x16x128xf32>
    tpu.vector_store %arg6[%c0_57, %c0_58, %c0_59], %83 {strides = array<i32>} : memref<1x16x128xf32, #tpu.memory_space<vmem>>, vector<1x16x128xf32>,
    return
  }
  func.func @transform_0(%arg0: i32) -> (i32, i32, i32) {
    %c0_i32 = arith.constant 0 : i32
    %c0_i32_0 = arith.constant 0 : i32
    %c0_i32_1 = arith.constant 0 : i32
    return %arg0, %c0_i32, %c0_i32_0 : i32, i32, i32
  }
  func.func @transform_1(%arg0: i32) -> (i32, i32, i32) {
    %c0_i32 = arith.constant 0 : i32
    %c0_i32_0 = arith.constant 0 : i32
    %c0_i32_1 = arith.constant 0 : i32
    %c0_i32_2 = arith.constant 0 : i32
    return %c0_i32, %c0_i32_0, %c0_i32_1 : i32, i32, i32
  }
  func.func @transform_2(%arg0: i32) -> (i32, i32) {
    %c0_i32 = arith.constant 0 : i32
    %c0_i32_0 = arith.constant 0 : i32
    %c0_i32_1 = arith.constant 0 : i32
    return %c0_i32, %c0_i32_0 : i32, i32
  }
  func.func @transform_3(%arg0: i32) -> (i32, i32, i32) {
    %c0_i32 = arith.constant 0 : i32
    %c0_i32_0 = arith.constant 0 : i32
    %c0_i32_1 = arith.constant 0 : i32
    %c0_i32_2 = arith.constant 0 : i32
    return %c0_i32, %c0_i32_0, %c0_i32_1 : i32, i32, i32
  }
  func.func @transform_4(%arg0: i32) -> (i32, i32) {
    %c0_i32 = arith.constant 0 : i32
    %c0_i32_0 = arith.constant 0 : i32
    %c0_i32_1 = arith.constant 0 : i32
    return %c0_i32, %c0_i32_0 : i32, i32
  }
  func.func @transform_5(%arg0: i32) -> (i32, i32, i32) {
    %c0_i32 = arith.constant 0 : i32
    %c0_i32_0 = arith.constant 0 : i32
    %c0_i32_1 = arith.constant 0 : i32
    return %arg0, %c0_i32, %c0_i32_0 : i32, i32, i32
  }
}

</mosaic_0001>

<bundles_post_ra>
// kernel: conv_block_forward.1
= control target key start
LH: loop header
LB: loop body
LE: loop exit
PB: predicated region body
PF: predicated region fallthrough
CT: control target
= control target key end

     0   :  { %s1891_s18 = smov 0   ;;  %s2243_s0 = inlined_call_operand.vmem [shape: bf16[2,20,128], index: 0, kind: input, shape index: {}]   ;;  %s2244_s1 = inlined_call_operand.vmem [shape: bf16[5,128,128], index: 1, kind: input, shape index: {}]   ;;  %s2245_s2 = inlined_call_operand.vmem [shape: f32[1,128], index: 2, kind: input, shape index: {}]   ;;  %s2246_s3 = inlined_call_operand.vmem [shape: bf16[5,128,128], index: 3, kind: input, shape index: {}]   ;;  %s2247_s4 = inlined_call_operand.vmem [shape: f32[1,128], index: 4, kind: input, shape index: {}]   ;;  %s2248_s5 = inlined_call_operand.vmem [shape: f32[2,16,128], index: 5, kind: output, shape index: {}]  }
   0x1 LB: > { %s1275_s19 = sadd.s32 4294967295, %s1858_s18   ;;  %p1279_p0 = scmp.ge.s32.totalorder %s1858_s18, 1  ;;  %s1858_s18 = sphi %s1891_s18, %s15_s18  }
   0x2   : > { %p187_p1 = scmp.lt.s32.totalorder %s1858_s18, 3 }
   0x4   : > { %p188_p2 = pnand %p1279_p0, %p187_p1 }
   0x5   : > { %p215_p3 = scmp.lt.s32.totalorder (!%p188_p2), %s1275_s19, 1 }
   0x6   : > { %191 = sbr.rel (%p188_p2) target bundleno = 416 (0x1a0), region = 40 }
   0xb   : > { %v1749_v0 = vld [vmem:[%s2244_s1 + $0x38] sm:$0xff]  ;;  %v1748_v4 = vld [vmem:[%s2244_s1 + $0x30] sm:$0xff]  ;;  %v1747_v8 = vld [vmem:[%s2244_s1 + $0x28] sm:$0xff]  ;;  %s2250_s19 = smov (!%p215_p3, %s1275_s19), 1  ;;  %vm551_vm0 = vcmask 1046528   ;;  %vm630_vm1 = vcmask 1045504  }
   0xc   : > { %v1757_v1 = vld [vmem:[%s2244_s1 + $0x78] sm:$0xff]  ;;  %463 = vmatpush.bf16.msra.mxu0 %v1749_v0  ;;  %v1756_v5 = vld [vmem:[%s2244_s1 + $0x70] sm:$0xff]  ;;  %v1755_v9 = vld [vmem:[%s2244_s1 + $0x68] sm:$0xff]  ;;  %s1840_s26 = smul.u32 12, %s2250_s19  ;;  %vm709_vm2 = vcmask 1044480   ;;  %vm788_vm3 = vcmask 1043456  }
   0xd   : > { %v1765_v2 = vld [vmem:[%s2244_s1 + $0xb8] sm:$0xff]  ;;  %530 = vmatpush.bf16.msra.mxu1 %v1757_v1  ;;  %v1764_v6 = vld [vmem:[%s2244_s1 + $0xb0] sm:$0xff]  ;;  %v1763_v10 = vld [vmem:[%s2244_s1 + $0xa8] sm:$0xff]  ;;  %vm808_vm4 = vcmask 1040384   ;;  %vm809_vm5 = vcmask 1044484   ;;  %s1741_s27 = sshll.u32 %s2250_s19, 4 }
   0xe   : > { %v1773_v3 = vld [vmem:[%s2244_s1 + $0xf8] sm:$0xff]  ;;  %609 = vmatpush.bf16.msra.mxu2 %v1765_v2  ;;  %v1772_v7 = vld [vmem:[%s2244_s1 + $0xf0] sm:$0xff]  ;;  %v1771_v11 = vld [vmem:[%s2244_s1 + $0xe8] sm:$0xff]  ;;  %s219_s12 = scalar_lea.vmem %s2243_s0, %s1840_s26  ;;  %s224_s30 = scalar_lea.vmem %s2248_s5, %s1741_s27 }
   0xf   : > { %688 = vmatpush.bf16.msra.mxu3 %v1773_v3  ;;  %v1746_v12 = vld [vmem:[%s2244_s1 + $0x20] sm:$0xff]  ;;  %v1745_v16 = vld [vmem:[%s2244_s1 + $0x18] sm:$0xff]  ;;  %v1744_v20 = vld [vmem:[%s2244_s1 + $0x10] sm:$0xff] }
  0x10   : > { %464 = vmatpush.bf16.msra.mxu0 %v1748_v4  ;;  %v1754_v13 = vld [vmem:[%s2244_s1 + $0x60] sm:$0xff]  ;;  %v1753_v17 = vld [vmem:[%s2244_s1 + $0x58] sm:$0xff]  ;;  %v1752_v21 = vld [vmem:[%s2244_s1 + $0x50] sm:$0xff] }
  0x11   : > { %531 = vmatpush.bf16.msra.mxu1 %v1756_v5  ;;  %v1762_v14 = vld [vmem:[%s2244_s1 + $0xa0] sm:$0xff]  ;;  %v1761_v18 = vld [vmem:[%s2244_s1 + $0x98] sm:$0xff]  ;;  %v1760_v22 = vld [vmem:[%s2244_s1 + $0x90] sm:$0xff] }
  0x12   : > { %610 = vmatpush.bf16.msra.mxu2 %v1764_v6  ;;  %v1770_v15 = vld [vmem:[%s2244_s1 + $0xe0] sm:$0xff]  ;;  %v1769_v19 = vld [vmem:[%s2244_s1 + $0xd8] sm:$0xff]  ;;  %v1768_v23 = vld [vmem:[%s2244_s1 + $0xd0] sm:$0xff] }
  0x13   : > { %689 = vmatpush.bf16.msra.mxu3 %v1772_v7  ;;  %v1743_v24 = vld [vmem:[%s2244_s1 + $0x8] sm:$0xff]  ;;  %v1742_v28 = vld [vmem:[%s2244_s1] sm:$0xff]  ;;  %v1781_v32 = vld [vmem:[%s2244_s1 + $0x138] sm:$0xff] }
  0x14   : > { %465 = vmatpush.bf16.msra.mxu0 %v1747_v8  ;;  %v1751_v25 = vld [vmem:[%s2244_s1 + $0x48] sm:$0xff]  ;;  %v1750_v29 = vld [vmem:[%s2244_s1 + $0x40] sm:$0xff]  ;;  %v1780_v34 = vld [vmem:[%s2244_s1 + $0x130] sm:$0xff] }
  0x15   : > { %532 = vmatpush.bf16.msra.mxu1 %v1755_v9  ;;  %v1759_v26 = vld [vmem:[%s2244_s1 + $0x88] sm:$0xff]  ;;  %v1758_v30 = vld [vmem:[%s2244_s1 + $0x80] sm:$0xff]  ;;  %v1777_v39 = vld [vmem:[%s2244_s1 + $0x118] sm:$0xff] }
  0x16   : > { %611 = vmatpush.bf16.msra.mxu2 %v1763_v10  ;;  %v1767_v27 = vld [vmem:[%s2244_s1 + $0xc8] sm:$0xff]  ;;  %v1766_v31 = vld [vmem:[%s2244_s1 + $0xc0] sm:$0xff]  ;;  %v1776_v41 = vld [vmem:[%s2244_s1 + $0x110] sm:$0xff] }
  0x17   : > { %690 = vmatpush.bf16.msra.mxu3 %v1771_v11  ;;  %v1822_v33 = vld [vmem:[%s219_s12] sm:$0xff]  ;;  %v1779_v35 = vld [vmem:[%s2244_s1 + $0x128] sm:$0xff]  ;;  %v1789_v50 = vld [vmem:[%s2246_s3 + $0x38] sm:$0xff] }
  0x18   : > { %466 = vmatpush.bf16.msra.mxu0 %v1746_v12  ;;  %v404_v36 = vld [vmem:[%s219_s12 + $0x8] sm:$0x3]  ;;  %v1778_v37 = vld [vmem:[%s2244_s1 + $0x120] sm:$0xff]  ;;  %v1797_v51 = vld [vmem:[%s2246_s3 + $0x78] sm:$0xff] }
  0x19   : > { %533 = vmatpush.bf16.msra.mxu1 %v1754_v13  ;;  %v410_v38 = vunpack.c.l.b16 %v404_v36  ;;  %v1775_v42 = vld [vmem:[%s2244_s1 + $0x108] sm:$0xff]  ;;  %v1774_v43 = vld [vmem:[%s2244_s1 + $0x100] sm:$0xff]  ;;  %v1805_v52 = vld [vmem:[%s2246_s3 + $0xb8] sm:$0xff] }
  0x1a   : > { %612 = vmatpush.bf16.msra.mxu2 %v1762_v14  ;;  %v2053_v53 = vld [vmem:[%s2246_s3 + $0xf8] sm:$0xff]  ;;  %v1788_v54 = vld [vmem:[%s2246_s3 + $0x30] sm:$0xff]  ;;  %v1787_v62 = vld [vmem:[%s2246_s3 + $0x28] sm:$0xff] }
  0x1b   : > { %691 = vmatpush.bf16.msra.mxu3 %v1770_v15  ;;  %v412_v40 = vpack.c.b16 %v410_v38, %v410_v38  ;;  %v1796_v55 = vld [vmem:[%s2246_s3 + $0x70] sm:$0xff]  ;;  %v1795_v63 = vld [vmem:[%s2246_s3 + $0x68] sm:$0xff]  ;;  %v1786_v2 = vld [vmem:[%s2246_s3 + $0x20] sm:$0xff] }
  0x1c   : > { %467 = vmatpush.bf16.msra.mxu0 %v1745_v16  ;;  %v1804_v56 = vld [vmem:[%s2246_s3 + $0xb0] sm:$0xff]  ;;  %v1803_v0 = vld [vmem:[%s2246_s3 + $0xa8] sm:$0xff]  ;;  %v1794_v3 = vld [vmem:[%s2246_s3 + $0x60] sm:$0xff] }
  0x1d   : > { %534 = vmatpush.bf16.msra.mxu1 %v1753_v17  ;;  %v2068_v57 = vld [vmem:[%s2246_s3 + $0xf0] sm:$0xff]  ;;  %v2089_v1 = vld [vmem:[%s2246_s3 + $0xe8] sm:$0xff]  ;;  %v1802_v4 = vld [vmem:[%s2246_s3 + $0xa0] sm:$0xff] }
  0x1e   : > { %613 = vmatpush.bf16.msra.mxu2 %v1761_v18  ;;  %v2104_v5 = vld [vmem:[%s2246_s3 + $0xe0] sm:$0xff]  ;;  %v1785_v10 = vld [vmem:[%s2246_s3 + $0x18] sm:$0xff]  ;;  %v1784_v14 = vld [vmem:[%s2246_s3 + $0x10] sm:$0xff] }
  0x1f   : > { %692 = vmatpush.bf16.msra.mxu3 %v1769_v19  ;;  %v1793_v11 = vld [vmem:[%s2246_s3 + $0x58] sm:$0xff]  ;;  %v1792_v15 = vld [vmem:[%s2246_s3 + $0x50] sm:$0xff]  ;;  %v1798_v36 = vld [vmem:[%s2246_s3 + $0x80] sm:$0xff] }
  0x20   : > { %468 = vmatpush.bf16.msra.mxu0 %v1744_v20  ;;  %v1801_v12 = vld [vmem:[%s2246_s3 + $0x98] sm:$0xff]  ;;  %v1800_v16 = vld [vmem:[%s2246_s3 + $0x90] sm:$0xff]  ;;  %vm810_vm6 = vmor %vm808_vm4, %vm809_vm5 }
  0x21   : > { %535 = vmatpush.bf16.msra.mxu1 %v1752_v21  ;;  %v2123_v13 = vld [vmem:[%s2246_s3 + $0xd8] sm:$0xff]  ;;  %v2140_v19 = vld [vmem:[%s2246_s3 + $0xd0] sm:$0xff] }
  0x22   : > { %614 = vmatpush.bf16.msra.mxu2 %v1760_v22 }
  0x23   : > { %693 = vmatpush.bf16.msra.mxu3 %v1768_v23 }
  0x24   : > { %469 = vmatpush.bf16.msra.mxu0 %v1743_v24 }
  0x25   : > { %536 = vmatpush.bf16.msra.mxu1 %v1751_v25  ;;  %v1783_v25 = vld [vmem:[%s2246_s3 + $0x8] sm:$0xff] }
  0x26   : > { %615 = vmatpush.bf16.msra.mxu2 %v1759_v26  ;;  %v1791_v26 = vld [vmem:[%s2246_s3 + $0x48] sm:$0xff] }
  0x27   : > { %694 = vmatpush.bf16.msra.mxu3 %v1767_v27  ;;  %v1799_v27 = vld [vmem:[%s2246_s3 + $0x88] sm:$0xff] }
  0x28   : > { %470 = vmatpush.bf16.msra.mxu0 %v1742_v28  ;;  %v1860_v28 = vmov 0  }
  0x29   : > { %537 = vmatpush.bf16.msra.mxu1 %v1750_v29  ;;  %802 = vst [vmem:[#allocation2] sm:$0x1] %v1860_v28 }
  0x2a   : > { %616 = vmatpush.bf16.msra.mxu2 %v1758_v30  ;;  %v2158_v30 = vld [vmem:[%s2246_s3 + $0xc8] sm:$0xff]  ;;  %803 = vst [vmem:[#allocation2 + $0x8] sm:$0x2] %v1860_v28 }
  0x2b   : > { %695 = vmatpush.bf16.msra.mxu3 %v1766_v31  ;;  %471 = vmatmul.bf16.vlgmr.msra.gmra.mxu0 %v1822_v33  ;;  %v1782_v31 = vld [vmem:[%s2246_s3] sm:$0xff] }
  0x2c   : > { %767 = vmatpush.bf16.msrb.mxu0 %v1781_v32  ;;  %538 = vmatmul.bf16.vlgmr.msra.gmra.mxu1 %v1822_v33  ;;  %v1790_v32 = vld [vmem:[%s2246_s3 + $0x40] sm:$0xff] }
  0x2d   : > { %617 = vmatmul.bf16.vlgmr.msra.gmra.mxu2 %v1822_v33  ;;  %883 = vmatpush.bf16.msrb.mxu1 %v1789_v50  ;;  %v1850_v50 = vld [vmem:[%s2245_s2] ss:$0 sm:$0xff] }
  0x2e   : > { %696 = vmatmul.bf16.vlgmr.msra.gmra.mxu3 %v1822_v33  ;;  %950 = vmatpush.bf16.msrb.mxu2 %v1797_v51  ;;  %v1820_v51 = vld [vmem:[%s2246_s3 + $0x130] sm:$0xff] }
  0x2f   : > { %1028 = vmatpush.bf16.msrb.mxu3 %v1805_v52 }
  0x30   : > { %768 = vmatpush.bf16.msrb.mxu0 %v1780_v34 }
  0x31   : > { %884 = vmatpush.bf16.msrb.mxu1 %v1788_v54 }
  0x32   : > { %951 = vmatpush.bf16.msrb.mxu2 %v1796_v55 }
  0x33   : > { %1029 = vmatpush.bf16.msrb.mxu3 %v1804_v56 }
  0x34   : > { %769 = vmatpush.bf16.msrb.mxu0 %v1779_v35 }
  0x35   : > { %885 = vmatpush.bf16.msrb.mxu1 %v1787_v62 }
  0x36   : > { %952 = vmatpush.bf16.msrb.mxu2 %v1795_v63 }
  0x37   : > { %1030 = vmatpush.bf16.msrb.mxu3 %v1803_v0 }
  0x38   : > { %770 = vmatpush.bf16.msrb.mxu0 %v1778_v37  ;;  %v2176_v37 = vld [vmem:[%s2246_s3 + $0xc0] sm:$0xff] }
  0x39   : > { %886 = vmatpush.bf16.msrb.mxu1 %v1786_v2 }
  0x3a   : > { %953 = vmatpush.bf16.msrb.mxu2 %v1794_v3 }
  0x3b   : > { %476 = vmatmul.bf16.gmra.mxu0 %v412_v40  ;;  %1031 = vmatpush.bf16.msrb.mxu3 %v1802_v4 }
  0x3c   : > { %771 = vmatpush.bf16.msrb.mxu0 %v1777_v39  ;;  %543 = vmatmul.bf16.gmra.mxu1 %v412_v40 }
  0x3d   : > { %622 = vmatmul.bf16.gmra.mxu2 %v412_v40  ;;  %887 = vmatpush.bf16.msrb.mxu1 %v1785_v10 }
  0x3e   : > { %701 = vmatmul.bf16.gmra.mxu3 %v412_v40  ;;  %954 = vmatpush.bf16.msrb.mxu2 %v1793_v11 }
  0x3f   : > { %1032 = vmatpush.bf16.msrb.mxu3 %v1801_v12 }
  0x40   : > { %772 = vmatpush.bf16.msrb.mxu0 %v1776_v41 }
  0x41   : > { %888 = vmatpush.bf16.msrb.mxu1 %v1784_v14 }
  0x42   : > { %955 = vmatpush.bf16.msrb.mxu2 %v1792_v15 }
  0x43   : > { %1033 = vmatpush.bf16.msrb.mxu3 %v1800_v16  ;;  %v1814_v16 = vld [vmem:[%s2246_s3 + $0x100] sm:$0xff] }
  0x44   : > { %773 = vmatpush.bf16.msrb.mxu0 %v1775_v42 }
  0x45   : > { %889 = vmatpush.bf16.msrb.mxu1 %v1783_v25 }
  0x46   : > { %956 = vmatpush.bf16.msrb.mxu2 %v1791_v26 }
  0x47   : > { %1034 = vmatpush.bf16.msrb.mxu3 %v1799_v27 }
  0x48   : > { %774 = vmatpush.bf16.msrb.mxu0 %v1774_v43 }
  0x49   : > { %890 = vmatpush.bf16.msrb.mxu1 %v1782_v31 }
  0x4a   : > { %957 = vmatpush.bf16.msrb.mxu2 %v1790_v32 }
  0x4b   : > { %775 = vmatmul.bf16.vlgmr.msrb.gmra.mxu0 %v1822_v33  ;;  %1035 = vmatpush.bf16.msrb.mxu3 %v1798_v36 }
  0x4c   : > { %1106 = vmatpush.bf16.msra.mxu0 %v2053_v53 }
  0x4e   : > { %1824 = vmatpush.bf16.msra.mxu2 %v2053_v53 }
  0x50   : > { %1107 = vmatpush.bf16.msra.mxu0 %v2068_v57 }
  0x52   : > { %1825 = vmatpush.bf16.msra.mxu2 %v2068_v57  ;;  %v1818_v57 = vld [vmem:[%s2246_s3 + $0x120] sm:$0xff] }
  0x54   : > { %1108 = vmatpush.bf16.msra.mxu0 %v2089_v1 }
  0x56   : > { %1826 = vmatpush.bf16.msra.mxu2 %v2089_v1 }
  0x58   : > { %1109 = vmatpush.bf16.msra.mxu0 %v2104_v5 }
  0x5a   : > { %1827 = vmatpush.bf16.msra.mxu2 %v2104_v5  ;;  %v1816_v5 = vld [vmem:[%s2246_s3 + $0x110] sm:$0xff] }
  0x5b   : > { %780 = vmatmul.bf16.gmra.mxu0 %v412_v40 }
  0x5c   : > { %1110 = vmatpush.bf16.msra.mxu0 %v2123_v13 }
  0x5e   : > { %1828 = vmatpush.bf16.msra.mxu2 %v2123_v13  ;;  %v1815_v13 = vld [vmem:[%s2246_s3 + $0x108] sm:$0xff] }
  0x60   : > { %1111 = vmatpush.bf16.msra.mxu0 %v2140_v19 }
  0x62   : > { %1829 = vmatpush.bf16.msra.mxu2 %v2140_v19 }
  0x64   : > { %1112 = vmatpush.bf16.msra.mxu0 %v2158_v30 }
  0x66   : > { %1830 = vmatpush.bf16.msra.mxu2 %v2158_v30 }
  0x68   : > { %1113 = vmatpush.bf16.msra.mxu0 %v2176_v37 }
  0x6a   : > { %1831 = vmatpush.bf16.msra.mxu2 %v2176_v37 }
  0xa8   : > { %v2029_v44 = vpop.f32.mrf.mxu0 }
  0xa9   : > { %v2031_v45 = vpop.f32.mrf.mxu1 }
  0xaa   : > { %v552_v17 = vrot.slane %v2031_v45, 1 }
  0xb0   : > { %v2033_v46 = vpop.f32.mrf.mxu2  ;;  %v2037_v48 = vpop.f32.mrf.mxu0 }
  0xb1   : > { %v2035_v47 = vpop.f32.mrf.mxu3  ;;  %v2039_v49 = vpop.f32.mrf.mxu1  ;;  %v631_v20 = vrot.slane %v2033_v46, 2 }
  0xb2   : > { %v553_v18 = vrot.slane %v2039_v49, 1  ;;  %v710_v33 = vrot.slane %v2035_v47, 3 }
  0xb4   : > { %v554_v29 = vsel %vm551_vm0, %v552_v17, %v553_v18 }
  0xb5   : > { %v559_v38 = vadd.f32 %v554_v29, %v2029_v44  ;;  %v1821_v44 = vld [vmem:[%s2246_s3 + $0x138] sm:$0xff] }
  0xb6   : > { %1184 = vmatpush.bf16.msra.mxu1 %v1821_v44  ;;  %1832 = vmatpush.bf16.msra.mxu3 %v1821_v44 }
  0xb8   : > { %v2070_v58 = vpop.f32.mrf.mxu2  ;;  %v477_v60 = vpop.f32.mrf.mxu0 }
  0xb9   : > { %v2072_v59 = vpop.f32.mrf.mxu3  ;;  %v2075_v61 = vpop.f32.mrf.mxu1  ;;  %v632_v21 = vrot.slane %v2070_v58, 2  ;;  %v1819_v60 = vld [vmem:[%s2246_s3 + $0x128] sm:$0xff] }
  0xba   : > { %v711_v35 = vrot.slane %v2072_v59, 3  ;;  %v555_v39 = vrot.slane %v2075_v61, 1  ;;  %1185 = vmatpush.bf16.msra.mxu1 %v1820_v51  ;;  %1833 = vmatpush.bf16.msra.mxu3 %v1820_v51 }
  0xbb   : > { %v633_v34 = vsel %vm630_vm1, %v631_v20, %v632_v21 }
  0xbc   : > { %v638_v40 = vadd.f32 %v633_v34, %v559_v38  ;;  %v712_v41 = vsel %vm709_vm2, %v710_v33, %v711_v35  ;;  %v556_v45 = vsel %vm551_vm0, %v553_v18, %v555_v39 }
  0xbd   : > { %v560_v55 = vadd.f32 %v556_v45, %v2037_v48 }
  0xbe   : > { %v717_v49 = vadd.f32 %v712_v41, %v638_v40  ;;  %1186 = vmatpush.bf16.msra.mxu1 %v1819_v60  ;;  %1834 = vmatpush.bf16.msra.mxu3 %v1819_v60 }
  0xc0   : > { %v2106_v6 = vpop.f32.mrf.mxu2  ;;  %v478_v8 = vpop.f32.mrf.mxu0 }
  0xc1   : > { %v2108_v7 = vpop.f32.mrf.mxu3  ;;  %v546_v9 = vpop.f32.mrf.mxu1  ;;  %v634_v42 = vrot.slane %v2106_v6, 2 }
  0xc2   : > { %v713_v53 = vrot.slane %v2108_v7, 3  ;;  %1187 = vmatpush.bf16.msra.mxu1 %v1818_v57  ;;  %1835 = vmatpush.bf16.msra.mxu3 %v1818_v57  ;;  %v1817_v9 = vld [vmem:[%s2246_s3 + $0x118] sm:$0xff] }
  0xc3   : > { %v635_v52 = vsel %vm630_vm1, %v632_v21, %v634_v42 }
  0xc4   : > { %v639_v58 = vadd.f32 %v635_v52, %v560_v55  ;;  %v714_v61 = vsel %vm709_vm2, %v711_v35, %v713_v53 }
  0xc6   : > { %v718_v2 = vadd.f32 %v714_v61, %v639_v58  ;;  %1188 = vmatpush.bf16.msra.mxu1 %v1817_v9  ;;  %1836 = vmatpush.bf16.msra.mxu3 %v1817_v9 }
  0xc8   : > { %v625_v22 = vpop.f32.mrf.mxu2  ;;  %v776_v24 = vpop.f32.mrf.mxu0 }
  0xc9   : > { %v704_v23 = vpop.f32.mrf.mxu3  ;;  %v789_v46 = vrot.slane %v776_v24, 4 }
  0xca   : > { %1189 = vmatpush.bf16.msra.mxu1 %v1816_v5  ;;  %1837 = vmatpush.bf16.msra.mxu3 %v1816_v5 }
  0xce   : > { %1190 = vmatpush.bf16.msra.mxu1 %v1815_v13  ;;  %1838 = vmatpush.bf16.msra.mxu3 %v1815_v13 }
  0xd0   : > { %v778_v43 = vpop.f32.mrf.mxu0 }
  0xd1   : > { %v790_v47 = vrot.slane %v778_v43, 4 }
  0xd2   : > { %1191 = vmatpush.bf16.msra.mxu1 %v1814_v16  ;;  %1839 = vmatpush.bf16.msra.mxu3 %v1814_v16 }
  0xd3   : > { %v791_v54 = vsel %vm788_vm3, %v789_v46, %v790_v47 }
  0xd4   : > { %v796_v56 = vadd.f32 %v791_v54, %v717_v49 }
  0xd6   : > { %v798_v59 = vadd.f32 %v1850_v50, %v796_v56 }
  0xd8   : > { %v800_v62 = vmax.f32 %v798_v59, 0.0  ;;  %v781_v63 = vpop.f32.mrf.mxu0 }
  0xd9   : > { %v792_v0 = vrot.slane %v781_v63, 4 }
  0xda   : > { %v804_v48 = vpack.c.bf16 %v800_v62, %v800_v62 }
  0xdb   : > { %v793_v3 = vsel %vm788_vm3, %v790_v47, %v792_v0  ;;  %v1851_v0 = vld [vmem:[%s2247_s4] ss:$0 sm:$0xff] }
  0xdc   : > { %v811_v4 = vrot.slane %v804_v48, 7  ;;  %v797_v6 = vadd.f32 %v793_v3, %v718_v2 }
  0xde   : > { %819 = vst [vmem:[#allocation2] sm:$0xe] %v811_v4  ;;  %v799_v7 = vadd.f32 %v1850_v50, %v797_v6  ;;  %v812_v11 = vrot.slane %v811_v4, 4 }
  0xe0   : > { %v801_v1 = vmax.f32 %v799_v7, 0.0  ;;  %v783_v8 = vpop.f32.mrf.mxu0 }
  0xe2   : > { %v805_v10 = vpack.c.bf16 %v801_v1, %v801_v1 }
  0xe4   : > { %v813_v12 = vrot.slane %v805_v10, 7 }
  0xe6   : > { %v814_v14 = vsel %vm810_vm6, %v812_v11, %v813_v12  ;;  %v815_v15 = vrot.slane %v813_v12, 4 }
  0xe7   : > { %820 = vst [vmem:[#allocation2 + $0x4] sm:$0xf] %v814_v14 }
  0xe8   : > { %821 = vst [vmem:[#allocation2 + $0x8] sm:$0x1] %v815_v15 }
  0xee   : > { %v1823_v17 = vld [vmem:[#allocation2] sm:$0xff] }
  0xef   : > { %891 = vmatmul.bf16.vlgmr.msrb.gmra.mxu1 %v1823_v17  ;;  %958 = vmatmul.bf16.vlgmr.msrb.gmra.mxu2 %v1823_v17  ;;  %v824_v18 = vld [vmem:[#allocation2 + $0x8] sm:$0x3] }
  0xf0   : > { %1036 = vmatmul.bf16.vlgmr.msrb.gmra.mxu3 %v1823_v17  ;;  %1114 = vmatmul.bf16.vlgmr.msra.gmra.mxu0 %v1823_v17  ;;  %v830_v19 = vunpack.c.l.b16 %v824_v18 }
  0xf2   : > { %v832_v20 = vpack.c.b16 %v830_v19, %v830_v19 }
  0xff   : > { %896 = vmatmul.bf16.gmra.mxu1 %v832_v20  ;;  %963 = vmatmul.bf16.gmra.mxu2 %v832_v20 }
 0x100   : > { %1041 = vmatmul.bf16.gmra.mxu3 %v832_v20 }
 0x10f   : > { %1119 = vmatmul.bf16.vlgmr.msra.gmra.mxu2 %v832_v20  ;;  %1192 = vmatmul.bf16.vlgmr.msra.gmra.mxu1 %v1823_v17 }
 0x110   : > { %1197 = vmatmul.bf16.vlgmr.msra.gmra.mxu3 %v832_v20 }
 0x16c   : > { %v892_v21 = vpop.f32.mrf.mxu1 }
 0x16d   : > { %v1115_v29 = vpop.f32.mrf.mxu0 }
 0x16e   : > { %v1127_v49 = vrot.slane %v1115_v29, 3 }
 0x172   : > { %v959_v22 = vpop.f32.mrf.mxu2 }
 0x173   : > { %v1037_v23 = vpop.f32.mrf.mxu3  ;;  %v971_v33 = vrot.slane %v959_v22, 1 }
 0x174   : > { %v894_v24 = vpop.f32.mrf.mxu1  ;;  %v1049_v43 = vrot.slane %v1037_v23, 2 }
 0x175   : > { %v1117_v39 = vpop.f32.mrf.mxu0 }
 0x176   : > { %v1128_v45 = vrot.slane %v1117_v39, 3 }
 0x178   : > { %v1129_v55 = vsel %vm709_vm2, %v1127_v49, %v1128_v45 }
 0x17a   : > { %v961_v25 = vpop.f32.mrf.mxu2 }
 0x17b   : > { %v1039_v26 = vpop.f32.mrf.mxu3  ;;  %v972_v32 = vrot.slane %v961_v25, 1 }
 0x17c   : > { %v897_v27 = vpop.f32.mrf.mxu1  ;;  %v1050_v40 = vrot.slane %v1039_v26, 2 }
 0x17d   : > { %v973_v36 = vsel %vm551_vm0, %v971_v33, %v972_v32 }
 0x17e   : > { %v978_v42 = vadd.f32 %v973_v36, %v892_v21  ;;  %v1051_v47 = vsel %vm630_vm1, %v1049_v43, %v1050_v40 }
 0x180   : > { %v1056_v50 = vadd.f32 %v1051_v47, %v978_v42 }
 0x182   : > { %v964_v28 = vpop.f32.mrf.mxu2  ;;  %v1134_v2 = vadd.f32 %v1129_v55, %v1056_v50 }
 0x183   : > { %v1042_v30 = vpop.f32.mrf.mxu3  ;;  %v974_v34 = vrot.slane %v964_v28, 1 }
 0x184   : > { %v898_v31 = vpop.f32.mrf.mxu1  ;;  %v1052_v44 = vrot.slane %v1042_v30, 2 }
 0x185   : > { %v975_v41 = vsel %vm551_vm0, %v972_v32, %v974_v34 }
 0x186   : > { %v979_v46 = vadd.f32 %v975_v41, %v894_v24  ;;  %v1053_v52 = vsel %vm630_vm1, %v1050_v40, %v1052_v44 }
 0x188   : > { %v1057_v56 = vadd.f32 %v1053_v52, %v979_v46 }
 0x18a   : > { %v966_v35 = vpop.f32.mrf.mxu2 }
 0x18b   : > { %v1044_v37 = vpop.f32.mrf.mxu3 }
 0x18c   : > { %v1193_v38 = vpop.f32.mrf.mxu1 }
 0x18d   : > { %v1205_v59 = vrot.slane %v1193_v38, 4 }
 0x192   : > { %v1120_v51 = vpop.f32.mrf.mxu2 }
 0x193   : > { %v1130_v53 = vrot.slane %v1120_v51, 3  ;;  %v1198_v54 = vpop.f32.mrf.mxu3 }
 0x194   : > { %v1195_v58 = vpop.f32.mrf.mxu1  ;;  %v1208_v61 = vrot.slane %v1198_v54, 4 }
 0x195   : > { %v1131_v60 = vsel %vm709_vm2, %v1128_v45, %v1130_v53  ;;  %v1206_v62 = vrot.slane %v1195_v58, 4 }
 0x196   : > { %v1135_v63 = vadd.f32 %v1131_v60, %v1057_v56 }
 0x197   : > { %v1207_v48 = vsel %vm788_vm3, %v1205_v59, %v1206_v62  ;;  %v1209_v57 = vsel %vm788_vm3, %v1206_v62, %v1208_v61 }
 0x198   : > { %v1212_v3 = vadd.f32 %v1207_v48, %v1134_v2  ;;  %v1213_v4 = vadd.f32 %v1209_v57, %v1135_v63 }
 0x19a   : > { %v1214_v6 = vadd.f32 %v1851_v0, %v1212_v3  ;;  %v1215_v7 = vadd.f32 %v1851_v0, %v1213_v4  ;;  %v1122_v1 = vpop.f32.mrf.mxu2 }
 0x19b   : > { %v1200_v8 = vpop.f32.mrf.mxu3 }
 0x19c   : > { %v1216_v9 = vmax.f32 %v1214_v6, 0.0  ;;  %v1217_v10 = vmax.f32 %v1215_v7, 0.0 }
 0x19e   : > { %1218 = vst [vmem:[%s224_s30] sm:$0xff] %v1216_v9 }
 0x19f   : > { %1219 = vst [vmem:[%s224_s30 + $0x8] sm:$0xff] %v1217_v10 }
 0x1a0 PF: > { %s15_s18 = sadd.s32 1, %s1858_s18  }
 0x1a1   : > { %p12_p4 = scmp.ge.s32.totalorder %s15_s18, 4  }
 0x1a3   :  { %14 = sbr.rel (!%p12_p4) target bundleno = 1 (0x1), region = 78 }

</bundles_post_ra>
